<compile_context>
chip_gen: v6e
topology: v6e:2x2x1
jax: 0.10.0
libtpu: 0.0.40
codegen_flags: <defaults>
</compile_context>

<pallas_src>
import jax
import jax.numpy as jnp
from jax.experimental import pallas as pl
from jax.experimental.pallas import tpu as pltpu


def _pick_w_tile(W):
    """Largest lane-dense W tile that divides W (falls back to full extent)."""
    for t in (512, 256, 128):
        if W % t == 0:
            return t
    return W  # block == full dim is always allowed by the (8,128) rule


# ----------------------------------------------------------------------------
# Encode kernel: channels-first column embedding + GELU + head on a W tile.
#   (D, K) @ (K, tw) -> GELU -> (Dh, D) @ (D, tw)   (bf16 MXU, f32 accumulate)
# ----------------------------------------------------------------------------
def _encode_kernel(x_ref, wbt_ref, bb_ref, wht_ref, bh_ref, o_ref):
    x = x_ref[0]                                      # (C, H, tw) f32
    C, H, tw = x.shape
    # 'n c w -> n w c' rearrange is fused here: merge (C, H) -> K (free,
    # leading-dim reshape) and keep the spatial tile on the lane axis.
    xk = x.reshape(C * H, tw).astype(jnp.bfloat16)    # (K, tw)

    # backbone: Conv2d(C, D, kernel=(H,1))  ==  (D, K) @ (K, tw)
    h = jnp.dot(wbt_ref[...], xk, preferred_element_type=jnp.float32)  # (D, tw) f32
    h = h + bb_ref[...]                               # (D, 1) broadcast over lanes
    h = jax.nn.gelu(h)                                # f32 elementwise (v5e-safe)

    # head: Linear(D -> Dh)  ==  (Dh, D) @ (D, tw)
    y = jnp.dot(wht_ref[...], h.astype(jnp.bfloat16),
                preferred_element_type=jnp.float32)   # (Dh, tw) f32
    y = y + bh_ref[...]                               # (Dh, 1) broadcast
    o_ref[0] = y.astype(o_ref.dtype)


def encode_cw(images, wbt, bb, wht, bh):
    """Fused backbone + rearrange + head.

    images: (N, C, H, W) f32 -> returns channels-first embeddings (N, Dh, W) f32
    (lane-dense layout; transpose to (N, W, Dh) is done wrapper-side only for
    the values returned to the caller).
    """
    N, C, H, W = images.shape
    K = C * H
    D = wbt.shape[0]
    Dh = wht.shape[0]
    tw = _pick_w_tile(W)

    return pl.pallas_call(
        _encode_kernel,
        out_shape=jax.ShapeDtypeStruct((N, Dh, W), jnp.float32),
        grid_spec=pltpu.PrefetchScalarGridSpec(
            num_scalar_prefetch=0,
            grid=(N, W // tw),
            in_specs=[
                # NCHW image tile, no wrapper-side transpose/copy.
                # (If DMA is still exposed on a profile, add
                #  pipeline_mode=pl.Buffered(3) here.)
                pl.BlockSpec((1, C, H, tw), lambda n, w: (n, 0, 0, w)),
                # Weights/biases: constant index map -> fetched once, resident.
                pl.BlockSpec((D, K), lambda n, w: (0, 0)),    # bf16
                pl.BlockSpec((D, 1), lambda n, w: (0, 0)),    # f32
                pl.BlockSpec((Dh, D), lambda n, w: (0, 0)),   # bf16
                pl.BlockSpec((Dh, 1), lambda n, w: (0, 0)),   # f32
            ],
            out_specs=pl.BlockSpec((1, Dh, tw), lambda n, w: (n, 0, w)),
        ),
        compiler_params=pltpu.CompilerParams(
            dimension_semantics=("parallel", "parallel"),
            vmem_limit_bytes=32 * 1024 * 1024),
    )(images, wbt, bb, wht, bh)


# ----------------------------------------------------------------------------
# Loss kernel: masked MSE on the lane-dense (N, Dh, W) embeddings.
# Elementwise accumulation into VMEM scratch; single reduce at the last step.
# ----------------------------------------------------------------------------
def _loss_kernel(o1_ref, o2_ref, m_ref, sq_ref, cnt_ref, sq_acc, cnt_acc):
    n = pl.program_id(0)
    w = pl.program_id(1)

    @pl.when(jnp.logical_and(n == 0, w == 0))
    def _():
        sq_acc[...] = jnp.zeros_like(sq_acc)
        cnt_acc[...] = jnp.zeros_like(cnt_acc)

    d = o1_ref[0] - o2_ref[0]            # (Dh, tw) f32
    m = m_ref[0]                         # (1, tw)  f32 combined mask
    sq_acc[...] += d * d * m             # VPU only, no per-step reduce
    cnt_acc[...] += m

    @pl.when(jnp.logical_and(n == pl.num_programs(0) - 1,
                             w == pl.num_programs(1) - 1))
    def _():
        sq_ref[...] = jnp.sum(sq_acc[...])[None, None]
        cnt_ref[...] = jnp.sum(cnt_acc[...])[None, None]


def masked_mse_loss_cw(o1_cw, o2_cw, combined_mask):
    """o1_cw, o2_cw: (N, Dh, W); combined_mask: (N, W) -> {'loss': scalar}."""
    N, Dh, W = o1_cw.shape
    tw = _pick_w_tile(W)
    mask3 = combined_mask.astype(jnp.float32).reshape(N, 1, W)

    emb_spec = pl.BlockSpec((1, Dh, tw), lambda n, w: (n, 0, w))
    msk_spec = pl.BlockSpec((1, 1, tw), lambda n, w: (n, 0, w))
    acc_spec = pl.BlockSpec((1, 1), lambda n, w: (0, 0))

    sq_sum, cnt_sum = pl.pallas_call(
        _loss_kernel,
        out_shape=(jax.ShapeDtypeStruct((1, 1), jnp.float32),
                   jax.ShapeDtypeStruct((1, 1), jnp.float32)),
        grid_spec=pltpu.PrefetchScalarGridSpec(
            num_scalar_prefetch=0,
            grid=(N, W // tw),
            in_specs=[emb_spec, emb_spec, msk_spec],
            out_specs=(acc_spec, acc_spec),
            scratch_shapes=[pltpu.VMEM((Dh, tw), jnp.float32),
                            pltpu.VMEM((1, tw), jnp.float32)],
        ),
        compiler_params=pltpu.CompilerParams(
            dimension_semantics=("arbitrary", "arbitrary")),
    )(o1_cw, o2_cw, mask3)

    eps = jnp.float32(1e-6)
    # mean over all masked elements (count of valid columns * Dh)
    loss = sq_sum[0, 0] / (cnt_sum[0, 0] * jnp.float32(Dh) + eps)
    return {"loss": loss}


# ----------------------------------------------------------------------------
# Module-level forward (matches JointEmbeddingTransformerEncoder.forward)
# ----------------------------------------------------------------------------
def forward(params, images1, images2, image_masks1, image_masks2,
            shift_masks1, shift_masks2):
    wbt, bb, wht, bh = params
    o1_cw = encode_cw(images1, wbt, bb, wht, bh)      # (N, Dh, W)
    o2_cw = encode_cw(images2, wbt, bb, wht, bh)      # (N, Dh, W)

    combined = (image_masks1.astype(jnp.float32) * image_masks2.astype(jnp.float32)
                * shift_masks1.astype(jnp.float32) * shift_masks2.astype(jnp.float32))
    loss = masked_mse_loss_cw(o1_cw, o2_cw, combined)

    # Module contract returns (N, W, Dh); this transpose is wrapper-side layout
    # plumbing for the detached outputs only — the loss path above consumes the
    # lane-dense layout directly.
    output1 = jax.lax.stop_gradient(jnp.transpose(o1_cw, (0, 2, 1)))
    output2 = jax.lax.stop_gradient(jnp.transpose(o2_cw, (0, 2, 1)))
    return {"output1": output1, "output2": output2, **loss}


def init_params(key, C, H, D, Dh):
    K = C * H
    k1, k2, k3, k4 = jax.random.split(key, 4)
    # Conv2d(C, D, kernel=(H,1)) weight flattened to (D, C*H); Linear weight (Dh, D).
    wbt = (jax.random.normal(k1, (D, K), jnp.float32) / jnp.sqrt(K)).astype(jnp.bfloat16)
    bb = 0.1 * jax.random.normal(k3, (D, 1), jnp.float32)
    wht = (jax.random.normal(k2, (Dh, D), jnp.float32) / jnp.sqrt(D)).astype(jnp.bfloat16)
    bh = 0.1 * jax.random.normal(k4, (Dh, 1), jnp.float32)
    return wbt, bb, wht, bh


# Pure-JAX reference of encode (for correctness check only).
def _encode_ref(images, wbt, bb, wht, bh):
    N, C, H, W = images.shape
    xk = images.reshape(N, C * H, W).astype(jnp.float32)
    h = jnp.einsum("dk,nkw->ndw", wbt.astype(jnp.float32), xk) + bb[None]
    h = jax.nn.gelu(h)
    y = jnp.einsum("ed,ndw->new", wht.astype(jnp.float32), h) + bh[None]
    return jnp.transpose(y, (0, 2, 1))                # (N, W, Dh)


if __name__ == "__main__":
    # Small shapes: batch=2, channels=3, H=16, W=32, hidden=32, head=32.
    N, C, H, W = 2, 3, 16, 32
    D, Dh = 32, 32

    key = jax.random.PRNGKey(0)
    kp, k1, k2, km1, km2, ks1, ks2 = jax.random.split(key, 7)

    params = init_params(kp, C, H, D, Dh)

    images1 = jax.random.normal(k1, (N, C, H, W), jnp.float32)
    images2 = jax.random.normal(k2, (N, C, H, W), jnp.float32)
    image_masks1 = (jax.random.uniform(km1, (N, W)) > 0.2).astype(jnp.float32)
    image_masks2 = (jax.random.uniform(km2, (N, W)) > 0.2).astype(jnp.float32)
    shift_masks1 = (jax.random.uniform(ks1, (N, W)) > 0.1).astype(jnp.float32)
    shift_masks2 = (jax.random.uniform(ks2, (N, W)) > 0.1).astype(jnp.float32)

    result = jax.jit(forward)(params, images1, images2,
                              image_masks1, image_masks2,
                              shift_masks1, shift_masks2)
    jax.block_until_ready(result)

    assert result["output1"].shape == (N, W, Dh)
    assert result["output2"].shape == (N, W, Dh)
    assert result["loss"].shape == ()

    # Numerical check against the pure-JAX reference (bf16 MXU -> loose tol).
    ref1 = _encode_ref(images1, *params)
    ref2 = _encode_ref(images2, *params)
    assert jnp.allclose(result["output1"], ref1, rtol=5e-2, atol=5e-2)
    assert jnp.allclose(result["output2"], ref2, rtol=5e-2, atol=5e-2)
    cm = image_masks1 * image_masks2 * shift_masks1 * shift_masks2
    d = result["output1"] - result["output2"]
    ref_loss = jnp.sum(d * d * cm[..., None]) / (jnp.sum(cm) * Dh + 1e-6)
    assert jnp.allclose(result["loss"], ref_loss, rtol=1e-3, atol=1e-5)

    print("KERNEL_OK")
</pallas_src>

<mosaic_0001>
module attributes {stable_mosaic.version = 11 : i64} {
  func.func @_encode_kernel(%arg0: i32, %arg1: i32, %arg2: memref<1x3x16x32xf32, #tpu.memory_space<vmem>>, %arg3: memref<32x48xbf16, #tpu.memory_space<vmem>>, %arg4: memref<32x1xf32, #tpu.memory_space<vmem>>, %arg5: memref<32x32xbf16, #tpu.memory_space<vmem>>, %arg6: memref<32x1xf32, #tpu.memory_space<vmem>>, %arg7: memref<1x32x32xf32, #tpu.memory_space<vmem>>) attributes {dimension_semantics = [#tpu.dimension_semantics<parallel>, #tpu.dimension_semantics<parallel>], iteration_bounds = array<i64: 2, 1>, scalar_prefetch = 0 : i64, scratch_operands = 0 : i64, tpu.core_type = #tpu.core_type<tc>, window_params = [{transform_indices = @transform_0, window_bounds = array<i64: 1, 3, 16, 32>}, {pipeline_mode = #tpu.pipeline_mode<synchronous>, transform_indices = @transform_1, window_bounds = array<i64: 32, 48>}, {pipeline_mode = #tpu.pipeline_mode<synchronous>, transform_indices = @transform_2, window_bounds = array<i64: 32, 1>}, {pipeline_mode = #tpu.pipeline_mode<synchronous>, transform_indices = @transform_3, window_bounds = array<i64: 32, 32>}, {pipeline_mode = #tpu.pipeline_mode<synchronous>, transform_indices = @transform_4, window_bounds = array<i64: 32, 1>}, {transform_indices = @transform_5, window_bounds = array<i64: 1, 32, 32>}]} {
    %c0 = arith.constant 0 : index
    %c0_0 = arith.constant 0 : index
    %c0_1 = arith.constant 0 : index
    %c0_2 = arith.constant 0 : index
    %0 = vector.load %arg2[%c0, %c0_0, %c0_1, %c0_2] : memref<1x3x16x32xf32, #tpu.memory_space<vmem>>, vector<1x3x16x32xf32>
    %1 = vector.shape_cast %0 : vector<1x3x16x32xf32> to vector<3x16x32xf32>
    %2 = vector.shape_cast %1 : vector<3x16x32xf32> to vector<48x32xf32>
    %3 = arith.truncf %2 : vector<48x32xf32> to vector<48x32xbf16>
    %c0_3 = arith.constant 0 : index
    %c0_4 = arith.constant 0 : index
    %4 = vector.load %arg3[%c0_3, %c0_4] : memref<32x48xbf16, #tpu.memory_space<vmem>>, vector<32x48xbf16>
    %cst = arith.constant dense<0.000000e+00> : vector<32x32xf32>
    %5 = tpu.matmul %4, %3, %cst {dimension_numbers = #tpu.dot_dimension_numbers<[1], [0], [0], [1], [0, 0, 1, 1], [], []>} : vector<32x48xbf16>, vector<48x32xbf16>, vector<32x32xf32> -> vector<32x32xf32>
    %c0_5 = arith.constant 0 : index
    %c0_6 = arith.constant 0 : index
    %6 = vector.load %arg4[%c0_5, %c0_6] : memref<32x1xf32, #tpu.memory_space<vmem>>, vector<32x1xf32>
    %7 = vector.broadcast %6 : vector<32x1xf32> to vector<32x32xf32>
    %8 = arith.addf %5, %7 : vector<32x32xf32>
    %9 = arith.mulf %8, %8 : vector<32x32xf32>
    %10 = arith.mulf %8, %9 : vector<32x32xf32>
    %cst_7 = arith.constant 4.471500e-02 : f32
    %11 = vector.broadcast %cst_7 : f32 to vector<32x32xf32>
    %12 = arith.mulf %11, %10 : vector<32x32xf32>
    %13 = arith.addf %8, %12 : vector<32x32xf32>
    %cst_8 = arith.constant 0.797884583 : f32
    %14 = vector.broadcast %cst_8 : f32 to vector<32x32xf32>
    %15 = arith.mulf %14, %13 : vector<32x32xf32>
    %16 = math.tanh %15 : vector<32x32xf32>
    %cst_9 = arith.constant 1.000000e+00 : f32
    %17 = vector.broadcast %cst_9 : f32 to vector<32x32xf32>
    %18 = arith.addf %17, %16 : vector<32x32xf32>
    %cst_10 = arith.constant 5.000000e-01 : f32
    %19 = vector.broadcast %cst_10 : f32 to vector<32x32xf32>
    %20 = arith.mulf %19, %18 : vector<32x32xf32>
    %21 = arith.mulf %8, %20 : vector<32x32xf32>
    %c0_11 = arith.constant 0 : index
    %c0_12 = arith.constant 0 : index
    %22 = vector.load %arg5[%c0_11, %c0_12] : memref<32x32xbf16, #tpu.memory_space<vmem>>, vector<32x32xbf16>
    %23 = arith.truncf %21 : vector<32x32xf32> to vector<32x32xbf16>
    %cst_13 = arith.constant dense<0.000000e+00> : vector<32x32xf32>
    %24 = tpu.matmul %22, %23, %cst_13 {dimension_numbers = #tpu.dot_dimension_numbers<[1], [0], [0], [1], [0, 0, 1, 1], [], []>} : vector<32x32xbf16>, vector<32x32xbf16>, vector<32x32xf32> -> vector<32x32xf32>
    %c0_14 = arith.constant 0 : index
    %c0_15 = arith.constant 0 : index
    %25 = vector.load %arg6[%c0_14, %c0_15] : memref<32x1xf32, #tpu.memory_space<vmem>>, vector<32x1xf32>
    %26 = vector.broadcast %25 : vector<32x1xf32> to vector<32x32xf32>
    %27 = arith.addf %24, %26 : vector<32x32xf32>
    %c0_16 = arith.constant 0 : index
    %c0_17 = arith.constant 0 : index
    %c0_18 = arith.constant 0 : index
    %28 = vector.load %arg7[%c0_16, %c0_17, %c0_18] : memref<1x32x32xf32, #tpu.memory_space<vmem>>, vector<1x32x32xf32>
    %29 = vector.shape_cast %28 : vector<1x32x32xf32> to vector<32x32xf32>
    %30 = vector.shape_cast %27 : vector<32x32xf32> to vector<1x32x32xf32>
    tpu.vector_store %arg7[%c0_16, %c0_17, %c0_18], %30 {strides = array<i32>} : memref<1x32x32xf32, #tpu.memory_space<vmem>>, vector<1x32x32xf32>,
    return
  }
  func.func @transform_0(%arg0: i32, %arg1: i32) -> (i32, i32, i32, i32) {
    %c0_i32 = arith.constant 0 : i32
    %c0_i32_0 = arith.constant 0 : i32
    %c0_i32_1 = arith.constant 0 : i32
    return %arg0, %c0_i32, %c0_i32_0, %arg1 : i32, i32, i32, i32
  }
  func.func @transform_1(%arg0: i32, %arg1: i32) -> (i32, i32) {
    %c0_i32 = arith.constant 0 : i32
    %c0_i32_0 = arith.constant 0 : i32
    %c0_i32_1 = arith.constant 0 : i32
    return %c0_i32, %c0_i32_0 : i32, i32
  }
  func.func @transform_2(%arg0: i32, %arg1: i32) -> (i32, i32) {
    %c0_i32 = arith.constant 0 : i32
    %c0_i32_0 = arith.constant 0 : i32
    %c0_i32_1 = arith.constant 0 : i32
    return %c0_i32, %c0_i32_0 : i32, i32
  }
  func.func @transform_3(%arg0: i32, %arg1: i32) -> (i32, i32) {
    %c0_i32 = arith.constant 0 : i32
    %c0_i32_0 = arith.constant 0 : i32
    %c0_i32_1 = arith.constant 0 : i32
    return %c0_i32, %c0_i32_0 : i32, i32
  }
  func.func @transform_4(%arg0: i32, %arg1: i32) -> (i32, i32) {
    %c0_i32 = arith.constant 0 : i32
    %c0_i32_0 = arith.constant 0 : i32
    %c0_i32_1 = arith.constant 0 : i32
    return %c0_i32, %c0_i32_0 : i32, i32
  }
  func.func @transform_5(%arg0: i32, %arg1: i32) -> (i32, i32, i32) {
    %c0_i32 = arith.constant 0 : i32
    %c0_i32_0 = arith.constant 0 : i32
    return %arg0, %c0_i32, %arg1 : i32, i32, i32
  }
}

module attributes {stable_mosaic.version = 11 : i64} {
  func.func @_encode_kernel(%arg0: i32, %arg1: i32, %arg2: memref<1x3x16x32xf32, #tpu.memory_space<vmem>>, %arg3: memref<32x48xbf16, #tpu.memory_space<vmem>>, %arg4: memref<32x1xf32, #tpu.memory_space<vmem>>, %arg5: memref<32x32xbf16, #tpu.memory_space<vmem>>, %arg6: memref<32x1xf32, #tpu.memory_space<vmem>>, %arg7: memref<1x32x32xf32, #tpu.memory_space<vmem>>) attributes {dimension_semantics = [#tpu.dimension_semantics<parallel>, #tpu.dimension_semantics<parallel>], iteration_bounds = array<i64: 2, 1>, scalar_prefetch = 0 : i64, scratch_operands = 0 : i64, tpu.core_type = #tpu.core_type<tc>, window_params = [{transform_indices = @transform_0, window_bounds = array<i64: 1, 3, 16, 32>}, {pipeline_mode = #tpu.pipeline_mode<synchronous>, transform_indices = @transform_1, window_bounds = array<i64: 32, 48>}, {pipeline_mode = #tpu.pipeline_mode<synchronous>, transform_indices = @transform_2, window_bounds = array<i64: 32, 1>}, {pipeline_mode = #tpu.pipeline_mode<synchronous>, transform_indices = @transform_3, window_bounds = array<i64: 32, 32>}, {pipeline_mode = #tpu.pipeline_mode<synchronous>, transform_indices = @transform_4, window_bounds = array<i64: 32, 1>}, {transform_indices = @transform_5, window_bounds = array<i64: 1, 32, 32>}]} {
    %c0 = arith.constant 0 : index
    %c0_0 = arith.constant 0 : index
    %c0_1 = arith.constant 0 : index
    %c0_2 = arith.constant 0 : index
    %0 = vector.load %arg2[%c0, %c0_0, %c0_1, %c0_2] : memref<1x3x16x32xf32, #tpu.memory_space<vmem>>, vector<1x3x16x32xf32>
    %1 = vector.shape_cast %0 : vector<1x3x16x32xf32> to vector<3x16x32xf32>
    %2 = vector.shape_cast %1 : vector<3x16x32xf32> to vector<48x32xf32>
    %3 = arith.truncf %2 : vector<48x32xf32> to vector<48x32xbf16>
    %c0_3 = arith.constant 0 : index
    %c0_4 = arith.constant 0 : index
    %4 = vector.load %arg3[%c0_3, %c0_4] : memref<32x48xbf16, #tpu.memory_space<vmem>>, vector<32x48xbf16>
    %cst = arith.constant dense<0.000000e+00> : vector<32x32xf32>
    %5 = tpu.matmul %4, %3, %cst {dimension_numbers = #tpu.dot_dimension_numbers<[1], [0], [0], [1], [0, 0, 1, 1], [], []>} : vector<32x48xbf16>, vector<48x32xbf16>, vector<32x32xf32> -> vector<32x32xf32>
    %c0_5 = arith.constant 0 : index
    %c0_6 = arith.constant 0 : index
    %6 = vector.load %arg4[%c0_5, %c0_6] : memref<32x1xf32, #tpu.memory_space<vmem>>, vector<32x1xf32>
    %7 = vector.broadcast %6 : vector<32x1xf32> to vector<32x32xf32>
    %8 = arith.addf %5, %7 : vector<32x32xf32>
    %9 = arith.mulf %8, %8 : vector<32x32xf32>
    %10 = arith.mulf %8, %9 : vector<32x32xf32>
    %cst_7 = arith.constant 4.471500e-02 : f32
    %11 = vector.broadcast %cst_7 : f32 to vector<32x32xf32>
    %12 = arith.mulf %11, %10 : vector<32x32xf32>
    %13 = arith.addf %8, %12 : vector<32x32xf32>
    %cst_8 = arith.constant 0.797884583 : f32
    %14 = vector.broadcast %cst_8 : f32 to vector<32x32xf32>
    %15 = arith.mulf %14, %13 : vector<32x32xf32>
    %16 = math.tanh %15 : vector<32x32xf32>
    %cst_9 = arith.constant 1.000000e+00 : f32
    %17 = vector.broadcast %cst_9 : f32 to vector<32x32xf32>
    %18 = arith.addf %17, %16 : vector<32x32xf32>
    %cst_10 = arith.constant 5.000000e-01 : f32
    %19 = vector.broadcast %cst_10 : f32 to vector<32x32xf32>
    %20 = arith.mulf %19, %18 : vector<32x32xf32>
    %21 = arith.mulf %8, %20 : vector<32x32xf32>
    %c0_11 = arith.constant 0 : index
    %c0_12 = arith.constant 0 : index
    %22 = vector.load %arg5[%c0_11, %c0_12] : memref<32x32xbf16, #tpu.memory_space<vmem>>, vector<32x32xbf16>
    %23 = arith.truncf %21 : vector<32x32xf32> to vector<32x32xbf16>
    %cst_13 = arith.constant dense<0.000000e+00> : vector<32x32xf32>
    %24 = tpu.matmul %22, %23, %cst_13 {dimension_numbers = #tpu.dot_dimension_numbers<[1], [0], [0], [1], [0, 0, 1, 1], [], []>} : vector<32x32xbf16>, vector<32x32xbf16>, vector<32x32xf32> -> vector<32x32xf32>
    %c0_14 = arith.constant 0 : index
    %c0_15 = arith.constant 0 : index
    %25 = vector.load %arg6[%c0_14, %c0_15] : memref<32x1xf32, #tpu.memory_space<vmem>>, vector<32x1xf32>
    %26 = vector.broadcast %25 : vector<32x1xf32> to vector<32x32xf32>
    %27 = arith.addf %24, %26 : vector<32x32xf32>
    %c0_16 = arith.constant 0 : index
    %c0_17 = arith.constant 0 : index
    %c0_18 = arith.constant 0 : index
    %28 = vector.load %arg7[%c0_16, %c0_17, %c0_18] : memref<1x32x32xf32, #tpu.memory_space<vmem>>, vector<1x32x32xf32>
    %29 = vector.shape_cast %28 : vector<1x32x32xf32> to vector<32x32xf32>
    %30 = vector.shape_cast %27 : vector<32x32xf32> to vector<1x32x32xf32>
    tpu.vector_store %arg7[%c0_16, %c0_17, %c0_18], %30 {strides = array<i32>} : memref<1x32x32xf32, #tpu.memory_space<vmem>>, vector<1x32x32xf32>,
    return
  }
  func.func @transform_0(%arg0: i32, %arg1: i32) -> (i32, i32, i32, i32) {
    %c0_i32 = arith.constant 0 : i32
    %c0_i32_0 = arith.constant 0 : i32
    %c0_i32_1 = arith.constant 0 : i32
    return %arg0, %c0_i32, %c0_i32_0, %arg1 : i32, i32, i32, i32
  }
  func.func @transform_1(%arg0: i32, %arg1: i32) -> (i32, i32) {
    %c0_i32 = arith.constant 0 : i32
    %c0_i32_0 = arith.constant 0 : i32
    %c0_i32_1 = arith.constant 0 : i32
    return %c0_i32, %c0_i32_0 : i32, i32
  }
  func.func @transform_2(%arg0: i32, %arg1: i32) -> (i32, i32) {
    %c0_i32 = arith.constant 0 : i32
    %c0_i32_0 = arith.constant 0 : i32
    %c0_i32_1 = arith.constant 0 : i32
    return %c0_i32, %c0_i32_0 : i32, i32
  }
  func.func @transform_3(%arg0: i32, %arg1: i32) -> (i32, i32) {
    %c0_i32 = arith.constant 0 : i32
    %c0_i32_0 = arith.constant 0 : i32
    %c0_i32_1 = arith.constant 0 : i32
    return %c0_i32, %c0_i32_0 : i32, i32
  }
  func.func @transform_4(%arg0: i32, %arg1: i32) -> (i32, i32) {
    %c0_i32 = arith.constant 0 : i32
    %c0_i32_0 = arith.constant 0 : i32
    %c0_i32_1 = arith.constant 0 : i32
    return %c0_i32, %c0_i32_0 : i32, i32
  }
  func.func @transform_5(%arg0: i32, %arg1: i32) -> (i32, i32, i32) {
    %c0_i32 = arith.constant 0 : i32
    %c0_i32_0 = arith.constant 0 : i32
    return %arg0, %c0_i32, %arg1 : i32, i32, i32
  }
}

module attributes {stable_mosaic.version = 11 : i64} {
  func.func @_loss_kernel(%arg0: i32, %arg1: i32, %arg2: memref<1x32x32xf32, #tpu.memory_space<vmem>>, %arg3: memref<1x32x32xf32, #tpu.memory_space<vmem>>, %arg4: memref<1x1x32xf32, #tpu.memory_space<vmem>>, %arg5: memref<1x1xf32, #tpu.memory_space<vmem>>, %arg6: memref<1x1xf32, #tpu.memory_space<vmem>>, %arg7: memref<32x32xf32, #tpu.memory_space<vmem>>, %arg8: memref<1x32xf32, #tpu.memory_space<vmem>>) attributes {dimension_semantics = [#tpu.dimension_semantics<arbitrary>, #tpu.dimension_semantics<arbitrary>], iteration_bounds = array<i64: 2, 1>, scalar_prefetch = 0 : i64, scratch_operands = 2 : i64, tpu.core_type = #tpu.core_type<tc>, window_params = [{transform_indices = @transform_0, window_bounds = array<i64: 1, 32, 32>}, {transform_indices = @transform_1, window_bounds = array<i64: 1, 32, 32>}, {transform_indices = @transform_2, window_bounds = array<i64: 1, 1, 32>}, {pipeline_mode = #tpu.pipeline_mode<synchronous>, transform_indices = @transform_3, window_bounds = array<i64: 1, 1>}, {pipeline_mode = #tpu.pipeline_mode<synchronous>, transform_indices = @transform_4, window_bounds = array<i64: 1, 1>}]} {
    %c0_i32 = arith.constant 0 : i32
    %0 = arith.cmpi eq, %arg0, %c0_i32 : i32
    %c0_i32_0 = arith.constant 0 : i32
    %1 = arith.cmpi eq, %arg1, %c0_i32_0 : i32
    %2 = arith.andi %0, %1 : i1
    %3 = arith.extui %2 : i1 to i32
    %c0_i32_1 = arith.constant 0 : i32
    %4 = arith.cmpi ne, %3, %c0_i32_1 : i32
    scf.if %4 {
      %cst = arith.constant 0.000000e+00 : f32
      %26 = vector.broadcast %cst : f32 to vector<32x32xf32>
      %c0_20 = arith.constant 0 : index
      %c0_21 = arith.constant 0 : index
      %27 = vector.load %arg7[%c0_20, %c0_21] : memref<32x32xf32, #tpu.memory_space<vmem>>, vector<32x32xf32>
      tpu.vector_store %arg7[%c0_20, %c0_21], %26 {strides = array<i32>} : memref<32x32xf32, #tpu.memory_space<vmem>>, vector<32x32xf32>,
      %cst_22 = arith.constant 0.000000e+00 : f32
      %28 = vector.broadcast %cst_22 : f32 to vector<1x32xf32>
      %c0_23 = arith.constant 0 : index
      %c0_24 = arith.constant 0 : index
      %29 = vector.load %arg8[%c0_23, %c0_24] : memref<1x32xf32, #tpu.memory_space<vmem>>, vector<1x32xf32>
      tpu.vector_store %arg8[%c0_23, %c0_24], %28 {strides = array<i32>} : memref<1x32xf32, #tpu.memory_space<vmem>>, vector<1x32xf32>,
    } else {
    }
    %c0 = arith.constant 0 : index
    %c0_2 = arith.constant 0 : index
    %c0_3 = arith.constant 0 : index
    %5 = vector.load %arg2[%c0, %c0_2, %c0_3] : memref<1x32x32xf32, #tpu.memory_space<vmem>>, vector<1x32x32xf32>
    %6 = vector.shape_cast %5 : vector<1x32x32xf32> to vector<32x32xf32>
    %c0_4 = arith.constant 0 : index
    %c0_5 = arith.constant 0 : index
    %c0_6 = arith.constant 0 : index
    %7 = vector.load %arg3[%c0_4, %c0_5, %c0_6] : memref<1x32x32xf32, #tpu.memory_space<vmem>>, vector<1x32x32xf32>
    %8 = vector.shape_cast %7 : vector<1x32x32xf32> to vector<32x32xf32>
    %9 = arith.subf %6, %8 : vector<32x32xf32>
    %c0_7 = arith.constant 0 : index
    %c0_8 = arith.constant 0 : index
    %c0_9 = arith.constant 0 : index
    %10 = vector.load %arg4[%c0_7, %c0_8, %c0_9] : memref<1x1x32xf32, #tpu.memory_space<vmem>>, vector<1x1x32xf32>
    %11 = vector.shape_cast %10 : vector<1x1x32xf32> to vector<1x32xf32>
    %c0_10 = arith.constant 0 : index
    %c0_11 = arith.constant 0 : index
    %12 = vector.load %arg7[%c0_10, %c0_11] : memref<32x32xf32, #tpu.memory_space<vmem>>, vector<32x32xf32>
    %13 = arith.mulf %9, %9 : vector<32x32xf32>
    %14 = vector.broadcast %11 : vector<1x32xf32> to vector<32x32xf32>
    %15 = arith.mulf %13, %14 : vector<32x32xf32>
    %16 = arith.addf %12, %15 : vector<32x32xf32>
    %c0_12 = arith.constant 0 : index
    %c0_13 = arith.constant 0 : index
    %17 = vector.load %arg7[%c0_12, %c0_13] : memref<32x32xf32, #tpu.memory_space<vmem>>, vector<32x32xf32>
    tpu.vector_store %arg7[%c0_12, %c0_13], %16 {strides = array<i32>} : memref<32x32xf32, #tpu.memory_space<vmem>>, vector<32x32xf32>,
    %c0_14 = arith.constant 0 : index
    %c0_15 = arith.constant 0 : index
    %18 = vector.load %arg8[%c0_14, %c0_15] : memref<1x32xf32, #tpu.memory_space<vmem>>, vector<1x32xf32>
    %19 = arith.addf %18, %11 : vector<1x32xf32>
    %c0_16 = arith.constant 0 : index
    %c0_17 = arith.constant 0 : index
    %20 = vector.load %arg8[%c0_16, %c0_17] : memref<1x32xf32, #tpu.memory_space<vmem>>, vector<1x32xf32>
    tpu.vector_store %arg8[%c0_16, %c0_17], %19 {strides = array<i32>} : memref<1x32xf32, #tpu.memory_space<vmem>>, vector<1x32xf32>,
    %c1_i32 = arith.constant 1 : i32
    %21 = arith.cmpi eq, %arg0, %c1_i32 : i32
    %c0_i32_18 = arith.constant 0 : i32
    %22 = arith.cmpi eq, %arg1, %c0_i32_18 : i32
    %23 = arith.andi %21, %22 : i1
    %24 = arith.extui %23 : i1 to i32
    %c0_i32_19 = arith.constant 0 : i32
    %25 = arith.cmpi ne, %24, %c0_i32_19 : i32
    scf.if %25 {
      %c0_20 = arith.constant 0 : index
      %c0_21 = arith.constant 0 : index
      %26 = vector.load %arg7[%c0_20, %c0_21] : memref<32x32xf32, #tpu.memory_space<vmem>>, vector<32x32xf32>
      %27 = vector.shape_cast %26 : vector<32x32xf32> to vector<1x32x32xf32>
      %cst = arith.constant dense<0.000000e+00> : vector<1xf32>
      %28 = vector.multi_reduction <add>, %27, %cst [1, 2] : vector<1x32x32xf32> to vector<1xf32>
      %29 = vector.shape_cast %28 : vector<1xf32> to vector<1x1x1xf32>
      %30 = vector.extract %29[0, 0, 0] : f32 from vector<1x1x1xf32>
      %31 = vector.broadcast %30 : f32 to vector<1x1xf32>
      %c0_22 = arith.constant 0 : index
      %c0_23 = arith.constant 0 : index
      %32 = vector.load %arg5[%c0_22, %c0_23] : memref<1x1xf32, #tpu.memory_space<vmem>>, vector<1x1xf32>
      tpu.vector_store %arg5[%c0_22, %c0_23], %31 {strides = array<i32>} : memref<1x1xf32, #tpu.memory_space<vmem>>, vector<1x1xf32>,
      %c0_24 = arith.constant 0 : index
      %c0_25 = arith.constant 0 : index
      %33 = vector.load %arg8[%c0_24, %c0_25] : memref<1x32xf32, #tpu.memory_space<vmem>>, vector<1x32xf32>
      %34 = vector.shape_cast %33 : vector<1x32xf32> to vector<1x1x32xf32>
      %cst_26 = arith.constant dense<0.000000e+00> : vector<1xf32>
      %35 = vector.multi_reduction <add>, %34, %cst_26 [1, 2] : vector<1x1x32xf32> to vector<1xf32>
      %36 = vector.shape_cast %35 : vector<1xf32> to vector<1x1x1xf32>
      %37 = vector.extract %36[0, 0, 0] : f32 from vector<1x1x1xf32>
      %38 = vector.broadcast %37 : f32 to vector<1x1xf32>
      %c0_27 = arith.constant 0 : index
      %c0_28 = arith.constant 0 : index
      %39 = vector.load %arg6[%c0_27, %c0_28] : memref<1x1xf32, #tpu.memory_space<vmem>>, vector<1x1xf32>
      tpu.vector_store %arg6[%c0_27, %c0_28], %38 {strides = array<i32>} : memref<1x1xf32, #tpu.memory_space<vmem>>, vector<1x1xf32>,
    } else {
    }
    return
  }
  func.func @transform_0(%arg0: i32, %arg1: i32) -> (i32, i32, i32) {
    %c0_i32 = arith.constant 0 : i32
    %c0_i32_0 = arith.constant 0 : i32
    return %arg0, %c0_i32, %arg1 : i32, i32, i32
  }
  func.func @transform_1(%arg0: i32, %arg1: i32) -> (i32, i32, i32) {
    %c0_i32 = arith.constant 0 : i32
    %c0_i32_0 = arith.constant 0 : i32
    return %arg0, %c0_i32, %arg1 : i32, i32, i32
  }
  func.func @transform_2(%arg0: i32, %arg1: i32) -> (i32, i32, i32) {
    %c0_i32 = arith.constant 0 : i32
    %c0_i32_0 = arith.constant 0 : i32
    return %arg0, %c0_i32, %arg1 : i32, i32, i32
  }
  func.func @transform_3(%arg0: i32, %arg1: i32) -> (i32, i32) {
    %c0_i32 = arith.constant 0 : i32
    %c0_i32_0 = arith.constant 0 : i32
    %c0_i32_1 = arith.constant 0 : i32
    return %c0_i32, %c0_i32_0 : i32, i32
  }
  func.func @transform_4(%arg0: i32, %arg1: i32) -> (i32, i32) {
    %c0_i32 = arith.constant 0 : i32
    %c0_i32_0 = arith.constant 0 : i32
    %c0_i32_1 = arith.constant 0 : i32
    return %c0_i32, %c0_i32_0 : i32, i32
  }
}

</mosaic_0001>

<bundles_post_ra>
// kernel: forward.4
= control target key start
LH: loop header
LB: loop body
LE: loop exit
PB: predicated region body
PF: predicated region fallthrough
CT: control target
= control target key end

     0   :  { %s720_s18 = smov 0   ;;  %s722_s19 = smov 0   ;;  %s801_s0 = inlined_call_operand.vmem [shape: f32[2,3,16,32], index: 0, kind: input, shape index: {}]   ;;  %s802_s1 = inlined_call_operand.vmem [shape: bf16[32,48], index: 1, kind: input, shape index: {}]   ;;  %s803_s2 = inlined_call_operand.vmem [shape: f32[32,1], index: 2, kind: input, shape index: {}]   ;;  %s804_s3 = inlined_call_operand.vmem [shape: bf16[32,32], index: 3, kind: input, shape index: {}]   ;;  %s805_s4 = inlined_call_operand.vmem [shape: f32[32,1], index: 4, kind: input, shape index: {}]   ;;  %s806_s5 = inlined_call_operand.vmem [shape: f32[2,32,32], index: 5, kind: output, shape index: {}]  }
   0x1   :  { %s724_s20 = smov 0  }
   0x2 LB: > { %s27_s21 = sadd.s32 1, %s683_s19  ;;  %p583_p0 = scmp.ge.s32.totalorder %s687_s20, 1  ;;  %s687_s20 = sphi %s724_s20, %s15_s20   ;;  %s683_s19 = sphi %s722_s19, %s808_s19   ;;  %s679_s18 = sphi %s720_s18, %s807_s18  }
   0x3   : > { %p29_p1 = scmp.ge.s32.totalorder %s27_s21, 2  ;;  %p206_p2 = scmp.lt.s32.totalorder %s687_s20, 3 }
   0x5   : > { %s810_s21 = smov (%p29_p1, %s27_s21), 0  ;;  %p207_p3 = pnand %p583_p0, %p206_p2 }
   0x6   : > { %p240_p4 = scmp.lt.s32.totalorder (!%p207_p3), %s679_s18, 1 }
   0x7   : > { %210 = sbr.rel (%p207_p3) target bundleno = 472 (0x1d8), region = 40 }
   0xc   : > { %v653_v0 = vld [vmem:[%s802_s1] sm:$0xff]   ;;  %vm304_vm0 = vcmask 392192   ;;  %s812_s18 = smov (!%p240_p4, %s679_s18), 1  ;;  %v272_v1 = vld [vmem:[%s803_s2 + $0x10] sm:$0xff]  ;;  %v689_v3 = vmov 0   ;;  %v273_v4 = vld [vmem:[%s803_s2 + $0x18] sm:$0xff] }
   0xd   : > { %613 = vmatprep.mubr.msk.bf16.mxu0 %vm304_vm0, %v653_v0  ;;  %v270_v2 = vld [vmem:[%s803_s2] sm:$0xff]  ;;  %651 = vset.pattern.permute.xlu0 %v689_v3  ;;  %s625_s28 = smul.u32 48, %s812_s18  ;;  %v271_v5 = vld [vmem:[%s803_s2 + $0x8] sm:$0xff]  ;;  %v404_v17 = vld [vmem:[%s805_s4 + $0x10] sm:$0xff]  ;;  %vm436_vm1 = vcmask 261120   ;;  %s597_s29 = sshll.u32 %s812_s18, 5 }
   0xe   : > { %652 = vset.pattern.permute.xlu1 %v689_v3  ;;  %286 = vperm.xlu0 %651, %v272_v1   ;;  %v402_v14 = vld [vmem:[%s805_s4] sm:$0xff]  ;;  %v403_v15 = vld [vmem:[%s805_s4 + $0x8] sm:$0xff]  ;;  %v405_v18 = vld [vmem:[%s805_s4 + $0x18] sm:$0xff]  ;;  %s255_s7 = scalar_lea.vmem %s806_s5, %s597_s29 }
   0xf   : > { %276 = vperm.xlu1 %652, %v270_v2   ;;  %s247_s10 = scalar_lea.vmem %s801_s0, %s625_s28  ;;  %v654_v19 = vld [vmem:[%s802_s1 + $0x8] sm:$0xff]   ;;  %v655_v20 = vld [vmem:[%s804_s3] sm:$0xff]  }
  0x10   : > { %v261_v6 = vld [vmem:[%s247_s10 + $0x20] sm:$0xff]  ;;  %v262_v7 = vld [vmem:[%s247_s10 + $0x28] sm:$0xff]  ;;  %v259_v8 = vld [vmem:[%s247_s10 + $0x10] sm:$0xff]  ;;  %621 = vmatprep.mubr.msk.bf16.mxu1 %vm436_vm1, %v655_v20 }
  0x11   : > { %v265_v9 = vpack.c.bf16 %v262_v7, %v261_v6  ;;  %v260_v10 = vld [vmem:[%s247_s10 + $0x18] sm:$0xff]  ;;  %v257_v12 = vld [vmem:[%s247_s10] sm:$0xff]  ;;  %v258_v13 = vld [vmem:[%s247_s10 + $0x8] sm:$0xff] }
  0x12   : > { %291 = vperm.xlu0 %651, %v273_v4   ;;  %v264_v11 = vpack.c.bf16 %v260_v10, %v259_v8  ;;  %v263_v16 = vpack.c.bf16 %v258_v13, %v257_v12  ;;  %v656_v7 = vld [vmem:[%s804_s3 + $0x8] sm:$0xff]  }
  0x13   : > { %281 = vperm.xlu1 %652, %v271_v5   ;;  %607 = vmatprep.subr.bf16.mxu0 %v265_v9 }
  0x14   : > { %608 = vmatpush3.bf16.msra.mxu0 %v265_v9 }
  0x15   : > { %609 = vmatprep.subr.bf16.mxu0 %v264_v11 }
  0x16   : > { %408 = vperm.xlu0 %651, %v402_v14  }
  0x17   : > { %413 = vperm.xlu1 %652, %v403_v15  }
  0x18   : > { %610 = vmatpush3.bf16.msra.mxu0 %v264_v11 }
  0x19   : > { %611 = vmatprep.subr.bf16.mxu0 %v263_v16 }
  0x1a   : > { %418 = vperm.xlu0 %651, %v404_v17  }
  0x1b   : > { %423 = vperm.xlu1 %652, %v405_v18  }
  0x1c   : > { %612 = vmatpush3.bf16.msra.mxu0 %v263_v16 }
  0x1f   : > { %614 = vmatmul.mubr.msk.bf16.vlgmr.msra.gmra.mxu0 %vm304_vm0, %v654_v19 }
  0x89   : > { %v287_v21 = vpop.permute.xlu0 %286 }
  0x8a   : > { %v277_v22 = vpop.permute.xlu1 %276 }
  0x8d   : > { %v292_v28 = vpop.permute.xlu0 %291 }
  0x8e   : > { %v282_v33 = vpop.permute.xlu1 %281 }
  0x91   : > { %v409_v8 = vpop.permute.xlu0 %408 }
  0x92   : > { %v414_v9 = vpop.permute.xlu1 %413 }
  0x95   : > { %v419_v10 = vpop.permute.xlu0 %418 }
  0x96   : > { %v424_v15 = vpop.permute.xlu1 %423 }
  0xdf   : > { %v615_v23 = vpop.f32.mrf.mxu0 }
  0xe0   : > { %v354_v24 = vadd.f32 %v615_v23, %v287_v21 }
  0xe1   : > { %v345_v25 = vpop.f32.mrf.mxu0 }
  0xe2   : > { %v362_v26 = vmul.f32 %v354_v24, %v354_v24  ;;  %v346_v27 = vadd.f32 %v345_v25, %v277_v22 }
  0xe3   : > { %v616_v29 = vpop.f32.mrf.mxu0 }
  0xe4   : > { %v366_v30 = vmul.f32 %v362_v26, %v354_v24  ;;  %v360_v31 = vmul.f32 %v346_v27, %v346_v27  ;;  %v357_v32 = vadd.f32 %v616_v29, %v292_v28 }
  0xe5   : > { %v348_v34 = vpop.f32.mrf.mxu0 }
  0xe6   : > { %v370_v35 = vmul.f32 0.044715, %v366_v30  ;;  %v364_v36 = vmul.f32 %v360_v31, %v346_v27  ;;  %v363_v37 = vmul.f32 %v357_v32, %v357_v32  ;;  %v349_v38 = vadd.f32 %v348_v34, %v282_v33 }
  0xe8   : > { %v374_v39 = vadd.f32 %v370_v35, %v354_v24  ;;  %v368_v40 = vmul.f32 0.044715, %v364_v36  ;;  %v367_v41 = vmul.f32 %v363_v37, %v357_v32  ;;  %v361_v42 = vmul.f32 %v349_v38, %v349_v38 }
  0xea   : > { %v378_v43 = vmul.f32 0.7978846, %v374_v39  ;;  %v372_v44 = vadd.f32 %v368_v40, %v346_v27  ;;  %v371_v45 = vmul.f32 0.044715, %v367_v41  ;;  %v365_v46 = vmul.f32 %v361_v42, %v349_v38 }
  0xec   : > { %v376_v47 = vmul.f32 0.7978846, %v372_v44  ;;  %v375_v48 = vadd.f32 %v371_v45, %v357_v32  ;;  %v369_v49 = vmul.f32 0.044715, %v365_v46  ;;  %657 = vtanh.f32 %v378_v43 }
  0xee   : > { %659 = vtanh.f32 %v376_v47  ;;  %v379_v50 = vmul.f32 0.7978846, %v375_v48  ;;  %v373_v51 = vadd.f32 %v369_v49, %v349_v38 }
  0xf0   : > { %v377_v52 = vmul.f32 0.7978846, %v373_v51  ;;  %661 = vtanh.f32 %v379_v50 }
  0xf2   : > { %663 = vtanh.f32 %v377_v52 }
  0xf9   : > { %v658_v53 = vpop.eup %657 }
  0xfa   : > { %v386_v54 = vadd.f32 1.0, %v658_v53 }
  0xfb   : > { %v660_v55 = vpop.eup %659 }
  0xfc   : > { %v384_v56 = vadd.f32 1.0, %v660_v55  ;;  %v390_v59 = vmul.f32 0.5, %v386_v54 }
  0xfd   : > { %v662_v57 = vpop.eup %661 }
  0xfe   : > { %v387_v58 = vadd.f32 1.0, %v662_v57  ;;  %v388_v63 = vmul.f32 0.5, %v384_v56  ;;  %v394_v0 = vmul.f32 %v390_v59, %v354_v24 }
  0xff   : > { %v664_v60 = vpop.eup %663 }
 0x100   : > { %v391_v61 = vmul.f32 0.5, %v387_v58  ;;  %v385_v62 = vadd.f32 1.0, %v664_v60  ;;  %v392_v4 = vmul.f32 %v388_v63, %v346_v27 }
 0x102   : > { %v395_v1 = vmul.f32 %v391_v61, %v357_v32  ;;  %v389_v2 = vmul.f32 0.5, %v385_v62 }
 0x104   : > { %v401_v3 = vpack.c.bf16 %v395_v1, %v394_v0  ;;  %v393_v5 = vmul.f32 %v389_v2, %v349_v38 }
 0x106   : > { %617 = vmatprep.subr.bf16.mxu1 %v401_v3  ;;  %v400_v6 = vpack.c.bf16 %v393_v5, %v392_v4 }
 0x107   : > { %618 = vmatpush3.bf16.msra.mxu1 %v401_v3 }
 0x108   : > { %619 = vmatprep.subr.bf16.mxu1 %v400_v6 }
 0x10b   : > { %620 = vmatpush3.bf16.msra.mxu1 %v400_v6 }
 0x10e   : > { %622 = vmatmul.mubr.msk.bf16.vlgmr.msra.gmra.mxu1 %vm436_vm1, %v656_v7 }
 0x1ce   : > { %v623_v11 = vpop.f32.mrf.mxu1 }
 0x1cf   : > { %v486_v12 = vadd.f32 %v623_v11, %v419_v10 }
 0x1d0   : > { %v477_v13 = vpop.f32.mrf.mxu1 }
 0x1d1   : > { %494 = vst.msk [vmem:[%s255_s7 + $0x10] sm:$0xff] %vm436_vm1, %v486_v12  ;;  %v478_v14 = vadd.f32 %v477_v13, %v409_v8 }
 0x1d2   : > { %v624_v16 = vpop.f32.mrf.mxu1 }
 0x1d3   : > { %492 = vst.msk [vmem:[%s255_s7] sm:$0xff] %vm436_vm1, %v478_v14  ;;  %v489_v17 = vadd.f32 %v624_v16, %v424_v15 }
 0x1d4   : > { %v480_v18 = vpop.f32.mrf.mxu1 }
 0x1d5   : > { %495 = vst.msk [vmem:[%s255_s7 + $0x18] sm:$0xff] %vm436_vm1, %v489_v17  ;;  %v481_v19 = vadd.f32 %v480_v18, %v414_v9 }
 0x1d7   : > { %493 = vst.msk [vmem:[%s255_s7 + $0x8] sm:$0xff] %vm436_vm1, %v481_v19 }
 0x1d8 PF: > { %s15_s20 = sadd.s32 1, %s687_s20   ;;  %s807_s18 = smov %s683_s19 }
 0x1d9   : > { %p12_p5 = scmp.ge.s32.totalorder %s15_s20, 4   ;;  %s808_s19 = smov %s810_s21 }
 0x1db   :  { %14 = sbr.rel (!%p12_p5) target bundleno = 2 (0x2), region = 70 }

// kernel: forward.3
= control target key start
LH: loop header
LB: loop body
LE: loop exit
PB: predicated region body
PF: predicated region fallthrough
CT: control target
= control target key end

     0   :  { %10 = vsyncpa [#allocation3], 0  ;;  %s968_s0 = inlined_call_operand.hbm [shape: f32[2,3,16,32], index: 0, kind: input, shape index: {}]   ;;  %s969_s1 = inlined_call_operand.vmem [shape: bf16[32,48], index: 1, kind: input, shape index: {}]   ;;  %s970_s2 = inlined_call_operand.vmem [shape: f32[32,1], index: 2, kind: input, shape index: {}]   ;;  %s971_s3 = inlined_call_operand.vmem [shape: bf16[32,32], index: 3, kind: input, shape index: {}]   ;;  %s972_s4 = inlined_call_operand.vmem [shape: f32[32,1], index: 4, kind: input, shape index: {}]   ;;  %s973_s5 = inlined_call_operand.vmem [shape: f32[2,32,32], index: 5, kind: output, shape index: {}]  }
   0x1   :  { %12 = vsyncpa [#allocation3 + $0x1], 0  ;;  %s834_s18 = smov 0   ;;  %s836_s19 = smov 0  }
   0x2   :  { %s838_s20 = smov 0   ;;  %s840_s21 = smov 0  }
   0x3   :  { %s842_s22 = smov 0   ;;  %s844_s23 = smov 0  }
   0x4 LB: > { %s599_s24 = sadd.s32 4294967295, %s798_s23   ;;  %s30_s25 = sadd.s32 1, %s794_s22  ;;  %s798_s23 = sphi %s844_s23, %s18_s23   ;;  %s794_s22 = sphi %s842_s22, %s980_s22   ;;  %s790_s21 = sphi %s840_s21, %s979_s21   ;;  %s786_s20 = sphi %s838_s20, %s978_s20   ;;  %s782_s19 = sphi %s836_s19, %s977_s19   ;;  %s778_s18 = sphi %s834_s18, %s976_s18  }
   0x5   : > { %p32_p0 = scmp.ge.s32.totalorder %s30_s25, 2  ;;  %s39_s26 = sadd.s32 1, %s786_s20 }
   0x6   : > { %p46_p1 = scmp.ne.s32.totalorder %s786_s20, %s782_s19  ;;  %p47_p2 = scmp.eq.s32.totalorder %s798_s23, 0 }
   0x7   : > { %s982_s25 = smov (%p32_p0, %s30_s25), 0  ;;  %p52_p4 = scmp.ne.s32.totalorder %s782_s19, %s778_s18 }
   0x8   : > { %p48_p3 = por %p47_p2, %p46_p1  ;;  %s34_s27 = ssub.s32 %s794_s22, %s982_s25 }
   0x9   : > { %p53_p5 = scmp.eq.s32.totalorder %s599_s24, 0  ;;  %p37_p6 = scmp.eq.s32.totalorder %s34_s27, 0 }
   0xa   : > { %p654_p8 = scmp.lt.s32.totalorder %s798_s23, 2  ;;  %s200_s30 = sand.u32 1, %s786_s20  }
   0xb   : > { %p873_p7 = por %p53_p5, %p52_p4  ;;  %s646_s6 = smul.u32 768, %s794_s22 }
   0xc   : > { %s879_s29 = scalar_select %p37_p6, %s786_s20, %s39_s26  }
   0xd   : > { %s645_s7 = smul.u32 48, %s200_s30  ;;  %s211_s10 = scalar_lea.hbm %s968_s0, %s646_s6 }
   0xe   : > { %p886_p9 = pnand %p654_p8, %p48_p3  ;;  %s201_s14 = scalar_lea.sflag [#allocation3], %s200_s30 }
   0xf   : > { %s204_s12 = scalar_lea.vmem [#allocation2], %s645_s7  ;;  %s800_s16 = smov [#allocation2]  }
  0x10   : > { %s212_s13 = sshll.u32 %s204_s12, 4  ;;  %p722_p10 = pneg %p886_p9  ;;  %s213_s13 = int_to_ptr.vmem [resolvable:$true] %s212_s13 }
  0x11   : > { %s733_s15 = scalar_lea.vmem %s213_s13, 768  ;;  %s738_s17 = sshll.u32 %s800_s16, 4  ;;  %s739_s17 = int_to_ptr.vmem [resolvable:$false] %s738_s17 }
  0x12   : > { %p734_p11 = scmp.ne.s32.totalorder %s213_s13, %s733_s15  ;;  %s740_s18 = scalar_lea.vmem %s739_s17, 1536 }
  0x13   : > { %p741_p0 = scmp.lt.s32.totalorder %s213_s13, %s739_s17  ;;  %p742_p1 = scmp.lt.s32.totalorder %s740_s18, %s733_s15 }
  0x14   : > { %p736_p12 = pnand %p734_p11, %p722_p10 }
  0x15   : > { %p743_p2 = por %p742_p1, %p741_p0 }
  0x16   : > { %p737_p13 = pneg %p736_p12 }
  0x18   : > { %p744_p3 = pnand %p743_p2, %p737_p13 }
  0x1a   : > { %747 = shalt.err (!%p744_p3)
}
  0x1b   : > { %s801_s24 = smov 128   ;;  %s802_s26 = smov 8  }
  0x1c   : > { %653 = dma.hbm_to_vmem [thread:$0]  (!%p886_p9), %s211_s10, 768, %s213_s13, %s201_s14, %s801_s24, %s801_s24, %s802_s26  }
  0x1d   : > { %p604_p4 = scmp.ge.s32.totalorder %s798_s23, 1  ;;  %p220_p5 = scmp.lt.s32.totalorder %s798_s23, 3 }
  0x1f   : > { %p221_p6 = pnand %p604_p4, %p220_p5 }
  0x20   : > { %s226_s27 = sand.u32 (!%p221_p6), 1, %s782_s19  }
  0x21   : > { %224 = sbr.rel (%p221_p6) target bundleno = 495 (0x1ef), region = 40  ;;  %s227_s6 = scalar_lea.sflag (!%p221_p6), [#allocation3], %s226_s27 }
  0x22   : > { %s647_s30 = smul.u32 (!%p221_p6), 48, %s226_s27 }
  0x24   : > { %s230_s7 = scalar_lea.vmem (!%p221_p6), [#allocation2], %s647_s30 }
  0x26   : > { %773 = dma.done.wait (%p873_p7), %s227_s6, 768  }
  0x27   : > { %775 = vsyncadd (%p873_p7), %s227_s6, 4294966528  ;;  %v803_v0 = vmov 0   ;;  %v273_v1 = vld [vmem:[%s230_s7 + $0x20] sm:$0xff]  ;;  %v274_v2 = vld [vmem:[%s230_s7 + $0x28] sm:$0xff]  ;;  %vm316_vm0 = vcmask 392192   ;;  %vm448_vm1 = vcmask 261120  }
  0x28   : > { %706 = vset.pattern.permute.xlu0 %v803_v0  ;;  %707 = vset.pattern.permute.xlu1 %v803_v0  ;;  %v271_v3 = vld [vmem:[%s230_s7 + $0x10] sm:$0xff]  ;;  %v277_v4 = vpack.c.bf16 %v274_v2, %v273_v1  ;;  %v272_v5 = vld [vmem:[%s230_s7 + $0x18] sm:$0xff]  ;;  %v269_v6 = vld [vmem:[%s230_s7] sm:$0xff]  ;;  %p260_p7 = scmp.lt.s32.totalorder %s790_s21, 1 }
  0x29   : > { %v270_v7 = vld [vmem:[%s230_s7 + $0x8] sm:$0xff]  ;;  %v276_v8 = vpack.c.bf16 %v272_v5, %v271_v3  ;;  %v708_v9 = vld [vmem:[%s969_s1] sm:$0xff]   ;;  %v284_v10 = vld [vmem:[%s970_s2 + $0x10] sm:$0xff] }
  0x2a   : > { %627 = vmatprep.subr.bf16.mxu0 %v277_v4  ;;  %633 = vmatprep.mubr.msk.bf16.mxu0 %vm316_vm0, %v708_v9  ;;  %v282_v11 = vld [vmem:[%s970_s2] sm:$0xff]  ;;  %v275_v12 = vpack.c.bf16 %v270_v7, %v269_v6  ;;  %v285_v13 = vld [vmem:[%s970_s2 + $0x18] sm:$0xff]  ;;  %v283_v14 = vld [vmem:[%s970_s2 + $0x8] sm:$0xff]  ;;  %s984_s21 = smov (!%p260_p7, %s790_s21), 1 }
  0x2b   : > { %628 = vmatpush3.bf16.msra.mxu0 %v277_v4  ;;  %298 = vperm.xlu0 %706, %v284_v10   ;;  %v414_v15 = vld [vmem:[%s972_s4] sm:$0xff]  ;;  %v709_v16 = vld [vmem:[%s969_s1 + $0x8] sm:$0xff]   ;;  %v416_v18 = vld [vmem:[%s972_s4 + $0x10] sm:$0xff]  ;;  %s617_s13 = sshll.u32 %s984_s21, 5 }
  0x2c   : > { %629 = vmatprep.subr.bf16.mxu0 %v276_v8  ;;  %288 = vperm.xlu1 %707, %v282_v11   ;;  %v415_v17 = vld [vmem:[%s972_s4 + $0x8] sm:$0xff]  ;;  %v417_v19 = vld [vmem:[%s972_s4 + $0x18] sm:$0xff]  ;;  %v710_v20 = vld [vmem:[%s971_s3] sm:$0xff]   ;;  %s267_s16 = scalar_lea.vmem %s973_s5, %s617_s13 }
  0x2d   : > { %641 = vmatprep.mubr.msk.bf16.mxu1 %vm448_vm1, %v710_v20  ;;  %v711_v7 = vld [vmem:[%s971_s3 + $0x8] sm:$0xff]  }
  0x2f   : > { %630 = vmatpush3.bf16.msra.mxu0 %v276_v8  ;;  %303 = vperm.xlu0 %706, %v285_v13  }
  0x30   : > { %631 = vmatprep.subr.bf16.mxu0 %v275_v12  ;;  %293 = vperm.xlu1 %707, %v283_v14  }
  0x33   : > { %632 = vmatpush3.bf16.msra.mxu0 %v275_v12  ;;  %420 = vperm.xlu0 %706, %v414_v15  }
  0x34   : > { %425 = vperm.xlu1 %707, %v415_v17  }
  0x36   : > { %634 = vmatmul.mubr.msk.bf16.vlgmr.msra.gmra.mxu0 %vm316_vm0, %v709_v16 }
  0x37   : > { %430 = vperm.xlu0 %706, %v416_v18  }
  0x38   : > { %435 = vperm.xlu1 %707, %v417_v19  }
  0xa6   : > { %v299_v21 = vpop.permute.xlu0 %298 }
  0xa7   : > { %v289_v22 = vpop.permute.xlu1 %288 }
  0xaa   : > { %v304_v28 = vpop.permute.xlu0 %303 }
  0xab   : > { %v294_v33 = vpop.permute.xlu1 %293 }
  0xae   : > { %v421_v8 = vpop.permute.xlu0 %420 }
  0xaf   : > { %v426_v9 = vpop.permute.xlu1 %425 }
  0xb2   : > { %v431_v10 = vpop.permute.xlu0 %430 }
  0xb3   : > { %v436_v15 = vpop.permute.xlu1 %435 }
  0xf6   : > { %v635_v23 = vpop.f32.mrf.mxu0 }
  0xf7   : > { %v366_v24 = vadd.f32 %v635_v23, %v299_v21 }
  0xf8   : > { %v357_v25 = vpop.f32.mrf.mxu0 }
  0xf9   : > { %v374_v26 = vmul.f32 %v366_v24, %v366_v24  ;;  %v358_v27 = vadd.f32 %v357_v25, %v289_v22 }
  0xfa   : > { %v636_v29 = vpop.f32.mrf.mxu0 }
  0xfb   : > { %v378_v30 = vmul.f32 %v374_v26, %v366_v24  ;;  %v372_v31 = vmul.f32 %v358_v27, %v358_v27  ;;  %v369_v32 = vadd.f32 %v636_v29, %v304_v28 }
  0xfc   : > { %v360_v34 = vpop.f32.mrf.mxu0 }
  0xfd   : > { %v382_v35 = vmul.f32 0.044715, %v378_v30  ;;  %v376_v36 = vmul.f32 %v372_v31, %v358_v27  ;;  %v375_v37 = vmul.f32 %v369_v32, %v369_v32  ;;  %v361_v38 = vadd.f32 %v360_v34, %v294_v33 }
  0xff   : > { %v386_v39 = vadd.f32 %v382_v35, %v366_v24  ;;  %v380_v40 = vmul.f32 0.044715, %v376_v36  ;;  %v379_v41 = vmul.f32 %v375_v37, %v369_v32  ;;  %v373_v42 = vmul.f32 %v361_v38, %v361_v38 }
 0x101   : > { %v390_v43 = vmul.f32 0.7978846, %v386_v39  ;;  %v384_v44 = vadd.f32 %v380_v40, %v358_v27  ;;  %v383_v45 = vmul.f32 0.044715, %v379_v41  ;;  %v377_v46 = vmul.f32 %v373_v42, %v361_v38 }
 0x103   : > { %v388_v47 = vmul.f32 0.7978846, %v384_v44  ;;  %v387_v48 = vadd.f32 %v383_v45, %v369_v32  ;;  %v381_v49 = vmul.f32 0.044715, %v377_v46  ;;  %712 = vtanh.f32 %v390_v43 }
 0x105   : > { %714 = vtanh.f32 %v388_v47  ;;  %v391_v50 = vmul.f32 0.7978846, %v387_v48  ;;  %v385_v51 = vadd.f32 %v381_v49, %v361_v38 }
 0x107   : > { %v389_v52 = vmul.f32 0.7978846, %v385_v51  ;;  %716 = vtanh.f32 %v391_v50 }
 0x109   : > { %718 = vtanh.f32 %v389_v52 }
 0x110   : > { %v713_v53 = vpop.eup %712 }
 0x111   : > { %v398_v54 = vadd.f32 1.0, %v713_v53 }
 0x112   : > { %v715_v55 = vpop.eup %714 }
 0x113   : > { %v396_v56 = vadd.f32 1.0, %v715_v55  ;;  %v402_v59 = vmul.f32 0.5, %v398_v54 }
 0x114   : > { %v717_v57 = vpop.eup %716 }
 0x115   : > { %v399_v58 = vadd.f32 1.0, %v717_v57  ;;  %v400_v63 = vmul.f32 0.5, %v396_v56  ;;  %v406_v0 = vmul.f32 %v402_v59, %v366_v24 }
 0x116   : > { %v719_v60 = vpop.eup %718 }
 0x117   : > { %v403_v61 = vmul.f32 0.5, %v399_v58  ;;  %v397_v62 = vadd.f32 1.0, %v719_v60  ;;  %v404_v4 = vmul.f32 %v400_v63, %v358_v27 }
 0x119   : > { %v407_v1 = vmul.f32 %v403_v61, %v369_v32  ;;  %v401_v2 = vmul.f32 0.5, %v397_v62 }
 0x11b   : > { %v413_v3 = vpack.c.bf16 %v407_v1, %v406_v0  ;;  %v405_v5 = vmul.f32 %v401_v2, %v361_v38 }
 0x11d   : > { %637 = vmatprep.subr.bf16.mxu1 %v413_v3  ;;  %v412_v6 = vpack.c.bf16 %v405_v5, %v404_v4 }
 0x11e   : > { %638 = vmatpush3.bf16.msra.mxu1 %v413_v3 }
 0x11f   : > { %639 = vmatprep.subr.bf16.mxu1 %v412_v6 }
 0x122   : > { %640 = vmatpush3.bf16.msra.mxu1 %v412_v6 }
 0x125   : > { %642 = vmatmul.mubr.msk.bf16.vlgmr.msra.gmra.mxu1 %vm448_vm1, %v711_v7 }
 0x1e5   : > { %v643_v11 = vpop.f32.mrf.mxu1 }
 0x1e6   : > { %v498_v12 = vadd.f32 %v643_v11, %v431_v10 }
 0x1e7   : > { %v489_v13 = vpop.f32.mrf.mxu1 }
 0x1e8   : > { %506 = vst.msk [vmem:[%s267_s16 + $0x10] sm:$0xff] %vm448_vm1, %v498_v12  ;;  %v490_v14 = vadd.f32 %v489_v13, %v421_v8 }
 0x1e9   : > { %v644_v16 = vpop.f32.mrf.mxu1 }
 0x1ea   : > { %504 = vst.msk [vmem:[%s267_s16] sm:$0xff] %vm448_vm1, %v490_v14  ;;  %v501_v17 = vadd.f32 %v644_v16, %v436_v15 }
 0x1eb   : > { %v492_v18 = vpop.f32.mrf.mxu1 }
 0x1ec   : > { %507 = vst.msk [vmem:[%s267_s16 + $0x18] sm:$0xff] %vm448_vm1, %v501_v17  ;;  %v493_v19 = vadd.f32 %v492_v18, %v426_v9 }
 0x1ee   : > { %505 = vst.msk [vmem:[%s267_s16 + $0x8] sm:$0xff] %vm448_vm1, %v493_v19 }
 0x1ef PF: > { %s18_s23 = sadd.s32 1, %s798_s23   ;;  %s976_s18 = smov %s782_s19 }
 0x1f0   : > { %p15_p8 = scmp.ge.s32.totalorder %s18_s23, 4   ;;  %s977_s19 = smov %s786_s20 }
 0x1f1   : > { %s978_s20 = smov %s879_s29  ;;  %s979_s21 = smov %s794_s22 }
 0x1f2   : > { %s980_s22 = smov %s982_s25  ;;  %17 = sbr.rel (!%p15_p8) target bundleno = 4 (0x4), region = 80 }
 0x1f7   :  { %535 = vsyncpa [#allocation3], 1 }
 0x1f8   :  { %537 = vsyncpa [#allocation3 + $0x1], 1 }

// kernel: forward.5
= control target key start
LH: loop header
LB: loop body
LE: loop exit
PB: predicated region body
PF: predicated region fallthrough
CT: control target
= control target key end

     0   :  { %10 = vsyncpa [#allocation5], 0  ;;  %s727_s0 = inlined_call_operand.vmem [shape: f32[2,32,32], index: 0, kind: input, shape index: {}]   ;;  %s728_s1 = inlined_call_operand.vmem [shape: f32[2,32,32], index: 1, kind: input, shape index: {}]   ;;  %s729_s2 = inlined_call_operand.vmem [shape: f32[2,1,32], index: 2, kind: input, shape index: {}]   ;;  %s730_s3 = inlined_call_operand.hbm [shape: f32[1,1], index: 3, kind: output, shape index: {0}]   ;;  %s731_s4 = inlined_call_operand.hbm [shape: f32[1,1], index: 4, kind: output, shape index: {1}]  }
   0x1   :  { %11 = vsyncpa [#allocation7], 0  ;;  %s644_s15 = smov 0   ;;  %s646_s16 = smov 0  }
   0x2   :  { %s648_s17 = smov 0  }
   0x3 LB: > { %s473_s18 = sadd.s32 4294967295, %s614_s17   ;;  %s29_s19 = sadd.s32 1, %s610_s16  ;;  %s614_s17 = sphi %s648_s17, %s17_s17   ;;  %s610_s16 = sphi %s646_s16, %s734_s16   ;;  %s606_s15 = sphi %s644_s15, %s733_s15  }
   0x4   : > { %p31_p0 = scmp.ge.s32.totalorder %s29_s19, 2  ;;  %p476_p1 = scmp.ge.s32.totalorder %s614_s17, 1 }
   0x5   : > { %p202_p2 = scmp.lt.s32.totalorder %s614_s17, 3 }
   0x6   : > { %s736_s19 = smov (%p31_p0, %s29_s19), 0 }
   0x7   : > { %p203_p3 = pnand %p476_p1, %p202_p2 }
   0x8   : > { %p240_p4 = scmp.lt.s32.totalorder (!%p203_p3), %s606_s15, 1  ;;  %p262_p5 = scmp.eq.s32.totalorder (!%p203_p3), %s606_s15, 0 }
   0x9   : > { %206 = sbr.rel (%p203_p3) target bundleno = 281 (0x119), region = 32 }
   0xe   : > { %s241_s20 = scalar_select %p240_p4, %s606_s15, 1  ;;  %vm268_vm0 = vcmask (%p262_p5), 261120   ;;  %vm273_vm1 = vcmask (%p262_p5), 253952   ;;  %v616_v0 = vmov (%p262_p5), 0.0  }
   0xf   : > { %267 = sbr.rel (!%p262_p5) target bundleno = 20 (0x14), region = 36  ;;  %269 = vst.msk [vmem:[#allocation2] sm:$0xff] (%p262_p5), %vm268_vm0, %v616_v0  ;;  %270 = vst.msk [vmem:[#allocation2 + $0x8] sm:$0xff] (%p262_p5), %vm268_vm0, %v616_v0 }
  0x10   : > { %s489_s21 = sshll.u32 %s241_s20, 5  ;;  %s261_s24 = scalar_lea.vmem %s729_s2, %s241_s20  ;;  %271 = vst.msk [vmem:[#allocation2 + $0x10] sm:$0xff] (%p262_p5), %vm268_vm0, %v616_v0  ;;  %272 = vst.msk [vmem:[#allocation2 + $0x18] sm:$0xff] (%p262_p5), %vm268_vm0, %v616_v0 }
  0x11   : > { %s247_s27 = scalar_lea.vmem %s727_s0, %s489_s21  ;;  %s255_s30 = scalar_lea.vmem %s728_s1, %s489_s21  ;;  %274 = vst.msk [vmem:[#allocation3] sm:$0x1] (%p262_p5), %vm273_vm1, %v616_v0 }
  0x14 PF: > { %v275_v1 = vld [vmem:[%s247_s27] sm:$0xff]  ;;  %v297_v3 = vlaneseq  ;;  %v276_v5 = vld [vmem:[%s247_s27 + $0x8] sm:$0xff]  ;;  %p319_p6 = scmp.eq.s32.totalorder %s606_s15, 1  ;;  %v277_v9 = vld [vmem:[%s247_s27 + $0x10] sm:$0xff]  ;;  %vm317_vm2 = vcmask 253952   ;;  %vm310_vm3 = vcmask 261120  }
  0x15   : > { %v279_v2 = vld [vmem:[%s255_s30] sm:$0xff]  ;;  %v280_v6 = vld [vmem:[%s255_s30 + $0x8] sm:$0xff]  ;;  %v281_v10 = vld [vmem:[%s255_s30 + $0x10] sm:$0xff]  ;;  %vm345_vm4 = vcmask (%p319_p6), 0  }
  0x16   : > { %v283_v4 = vsub.f32 %v275_v1, %v279_v2  ;;  %v298_v7 = vshrl.u32 %v297_v3, 7  ;;  %v284_v8 = vsub.f32 %v276_v5, %v280_v6  ;;  %v287_v11 = vld [vmem:[%s261_s24] sm:$0x1]  ;;  %v285_v12 = vsub.f32 %v277_v9, %v281_v10  ;;  %v278_v13 = vld [vmem:[%s247_s27 + $0x18] sm:$0xff]  ;;  %v289_v25 = vld [vmem:[#allocation2 + $0x8] sm:$0xff] }
  0x17   : > { %v282_v14 = vld [vmem:[%s255_s30 + $0x18] sm:$0xff]  ;;  %v288_v22 = vld [vmem:[#allocation2] sm:$0xff]  ;;  %v290_v26 = vld [vmem:[#allocation2 + $0x10] sm:$0xff] }
  0x18   : > { %v292_v15 = vmul.f32 %v283_v4, %v283_v4  ;;  %v299_v16 = vsub.s32 0, %v298_v7  ;;  %v293_v17 = vmul.f32 %v284_v8, %v284_v8  ;;  %v286_v18 = vsub.f32 %v278_v13, %v282_v14  ;;  %v315_v19 = vld [vmem:[#allocation3] sm:$0x1]  ;;  %v291_v27 = vld [vmem:[#allocation2 + $0x18] sm:$0xff] }
  0x19   : > { %v294_v20 = vmul.f32 %v285_v12, %v285_v12  ;;  %v316_v21 = vadd.f32 %v315_v19, %v287_v11 }
  0x1a   : > { %v300_v23 = vrot.slane %v287_v11, %v299_v16  ;;  %v295_v24 = vmul.f32 %v286_v18, %v286_v18 }
  0x1b   : > { %318 = vst.msk [vmem:[#allocation3] sm:$0x1] %vm317_vm2, %v316_v21 }
  0x1c   : > { %v302_v28 = vmul.f32 %v300_v23, %v292_v15  ;;  %v303_v29 = vmul.f32 %v300_v23, %v293_v17  ;;  %v304_v30 = vmul.f32 %v300_v23, %v294_v20  ;;  %v305_v31 = vmul.f32 %v300_v23, %v295_v24 }
  0x1d   : > { %323 = sbr.rel (!%p319_p6) target bundleno = 253 (0xfd), region = 40 }
  0x1e   : > { %v306_v32 = vadd.f32 %v302_v28, %v288_v22  ;;  %v307_v33 = vadd.f32 %v303_v29, %v289_v25  ;;  %v308_v34 = vadd.f32 %v304_v30, %v290_v26  ;;  %v309_v35 = vadd.f32 %v305_v31, %v291_v27 }
  0x20   : > { %311 = vst.msk [vmem:[#allocation2] sm:$0xff] %vm310_vm3, %v306_v32  ;;  %312 = vst.msk [vmem:[#allocation2 + $0x8] sm:$0xff] %vm310_vm3, %v307_v33 }
  0x21   : > { %313 = vst.msk [vmem:[#allocation2 + $0x10] sm:$0xff] %vm310_vm3, %v308_v34  ;;  %314 = vst.msk [vmem:[#allocation2 + $0x18] sm:$0xff] %vm310_vm3, %v309_v35 }
  0x22   : > { %v347_v47 = vld [vmem:[#allocation3] sm:$0x1] }
  0x23   : > { %v348_v48 = vsel %vm317_vm2, %v347_v47, 0.0 }
  0x27   : > { %v324_v36 = vld [vmem:[#allocation2] sm:$0xff]  ;;  %v325_v37 = vld [vmem:[#allocation2 + $0x8] sm:$0xff] }
  0x28   : > { %v326_v38 = vld [vmem:[#allocation2 + $0x10] sm:$0xff]  ;;  %v327_v39 = vld [vmem:[#allocation2 + $0x18] sm:$0xff]  ;;  %v328_v40 = vsel %vm310_vm3, %v324_v36, 0.0  ;;  %v329_v41 = vsel %vm310_vm3, %v325_v37, 0.0 }
  0x29   : > { %v331_v42 = vsel %vm310_vm3, %v326_v38, 0.0  ;;  %v330_v43 = vadd.f32 %v329_v41, %v328_v40  ;;  %v333_v44 = vsel %vm310_vm3, %v327_v39, 0.0 }
  0x2b   : > { %v332_v45 = vadd.f32 %v331_v42, %v330_v43 }
  0x2d   : > { %v334_v46 = vadd.f32 %v333_v44, %v332_v45 }
  0x2f   : > { %335 = vadd.xlane.f32.xlu0 %v334_v46 }
  0x33   : > { %349 = vadd.xlane.f32.xlu0 %v348_v48 }
  0xb8   : > { %v336_v49 = vpop.xlane.xlu0 %335 }
  0xb9   : > { %v337_v50 = vrot.slane %v336_v49, 4 }
  0xbb   : > { %v338_v51 = vadd.f32 %v337_v50, %v336_v49 }
  0xbc   : > { %v350_v52 = vpop.xlane.xlu0 %349 }
  0xbd   : > { %v339_v53 = vrot.slane %v338_v51, 2  ;;  %v351_v54 = vrot.slane %v350_v52, 4 }
  0xbf   : > { %v352_v55 = vadd.f32 %v351_v54, %v350_v52  ;;  %v340_v56 = vadd.f32 %v339_v53, %v338_v51 }
  0xc1   : > { %v353_v57 = vrot.slane %v352_v55, 2  ;;  %v341_v58 = vrot.slane %v340_v56, 1 }
  0xc3   : > { %v354_v59 = vadd.f32 %v353_v57, %v352_v55  ;;  %v342_v60 = vadd.f32 %v341_v58, %v340_v56 }
  0xc5   : > { %493 = vpush %v342_v60  ;;  %v355_v61 = vrot.slane %v354_v59, 1 }
  0xc7   : > { %v356_v62 = vadd.f32 %v355_v61, %v354_v59 }
  0xc9   : > { %495 = vpush %v356_v62 }
  0xf6   : > { %s494_s5 = spop %493 }
  0xf7   : > { %v344_v63 = vstv %s494_s5 }
  0xf8   : > { %346 = vst.msk [vmem:[#allocation4] sm:$0x1] %vm345_vm4, %v344_v63 }
  0xfa   : > { %s496_s6 = spop %495 }
  0xfb   : > { %v358_v0 = vstv %s496_s6 }
  0xfc   : > { %359 = vst.msk [vmem:[#allocation6] sm:$0x1] %vm345_vm4, %v358_v0 }
  0xfd PF: > { %p692_p7 = scmp.eq.s32.totalorder %s473_s18, 1  ;;  %s617_s8 = smov [#allocation4]  }
  0xfe   : > { %s367_s9 = sshll.u32 %s617_s8, 4  ;;  %s618_s10 = smov [#allocation6]   ;;  %s368_s9 = int_to_ptr.vmem [resolvable:$true] %s367_s9 }
  0xff   : > { %s378_s11 = sshll.u32 %s618_s10, 4  ;;  %s536_s12 = scalar_lea.vmem %s368_s9, 16  ;;  %s379_s11 = int_to_ptr.vmem [resolvable:$true] %s378_s11 }
 0x100   : > { %p537_p8 = scmp.ne.s32.totalorder %s368_s9, %s536_s12  ;;  %s542_s13 = scalar_lea.vmem %s368_s9, 32 }
 0x101   : > { %p543_p11 = scmp.lt.s32.totalorder %s368_s9, %s368_s9  ;;  %p544_p12 = scmp.lt.s32.totalorder %s542_s13, %s536_s12 }
 0x102   : > { %p538_p9 = pnand %p537_p8, %p692_p7 }
 0x103   : > { %p545_p13 = por %p544_p12, %p543_p11 }
 0x104   : > { %p539_p10 = pneg %p538_p9 }
 0x106   : > { %p546_p0 = pnand %p545_p13, %p539_p10 }
 0x108   : > { %549 = shalt.err (!%p546_p0)
}
 0x109   : > { %498 = dma.vmem_to_hbm [thread:$0]  (%p692_p7), %s368_s9, 16, %s730_s3, [#allocation5]  }
 0x10a   : > { %s560_s18 = scalar_lea.vmem %s379_s11, 16  ;;  %s566_s20 = scalar_lea.vmem %s379_s11, 32 }
 0x10b   : > { %p561_p1 = scmp.ne.s32.totalorder %s379_s11, %s560_s18  ;;  %p567_p4 = scmp.lt.s32.totalorder %s379_s11, %s379_s11 }
 0x10c   : > { %p568_p5 = scmp.lt.s32.totalorder %s566_s20, %s560_s18 }
 0x10d   : > { %p562_p2 = pnand %p561_p1, %p692_p7 }
 0x10e   : > { %p569_p6 = por %p568_p5, %p567_p4 }
 0x10f   : > { %p563_p3 = pneg %p562_p2 }
 0x111   : > { %p570_p8 = pnand %p569_p6, %p563_p3 }
 0x113   : > { %573 = shalt.err (!%p570_p8)
}
 0x114   : > { %500 = dma.vmem_to_hbm [thread:$0]  (%p692_p7), %s379_s11, 16, %s731_s4, [#allocation7]  }
 0x115   : > { %597 = dma.done.wait (%p692_p7), [#allocation5], 16  }
 0x116   : > { %599 = vsyncadd (%p692_p7), [#allocation5], 4294967280 }
 0x117   : > { %601 = dma.done.wait (%p692_p7), [#allocation7], 16  }
 0x118   : > { %603 = vsyncadd (%p692_p7), [#allocation7], 4294967280 }
 0x119 PF: > { %s17_s17 = sadd.s32 1, %s614_s17   ;;  %s733_s15 = smov %s610_s16 }
 0x11a   : > { %p14_p9 = scmp.ge.s32.totalorder %s17_s17, 4   ;;  %s734_s16 = smov %s736_s19 }
 0x11c   :  { %16 = sbr.rel (!%p14_p9) target bundleno = 3 (0x3), region = 81 }
 0x121   :  { %395 = vsyncpa [#allocation5], 1 }
 0x122   :  { %397 = vsyncpa [#allocation5 + $0x1], 1 }
 0x123   :  { %398 = vsyncpa [#allocation7], 1 }

</bundles_post_ra>
